<compile_context>
chip_gen: v6e
topology: v6e:2x2x1
jax: 0.10.0
libtpu: 0.0.40
codegen_flags: <defaults>
</compile_context>

<pallas_src>
import math

import jax
import jax.numpy as jnp
from jax.experimental import pallas as pl
from jax.experimental.pallas import tpu as pltpu


def _round_up(x, m):
    return ((x + m - 1) // m) * m


def _readout_kernel(x_ref, w_ref, o_ref):
    # x_ref: (tile_n, c_blk) node slab; w_ref: (c_blk, H) resident pre-scaled weight.
    # Natural MXU orientation (lhs contracts on its last dim, rhs on its first):
    # no transpose of the large x tile, output written directly as (tile_n, H).
    o_ref[...] = jnp.dot(
        x_ref[...], w_ref[...], preferred_element_type=jnp.float32
    ).astype(o_ref.dtype)


def linear_readout_block(x, weight, num_scalars, *, target_vmem_bytes=12 * 1024 * 1024):
    """Forward of MACE LinearReadoutBlock: out = x[:, :num_scalars] @ weight / sqrt(num_scalars).

    x:      (N, irreps_dim)  e3nn flattened-irreps features, 0e channels leading.
    weight: (num_scalars, H) e3nn 0e->0e path weights (H = # of 0e output channels, 1 here).
    """
    N, irreps_dim = x.shape
    C0, H = weight.shape
    assert C0 == num_scalars and num_scalars <= irreps_dim

    itemsize = jnp.dtype(x.dtype).itemsize

    # Fold e3nn's 1/sqrt(fan_in) path normalization into the tiny weight once; keep it
    # (C, H) so the kernel matmul needs no operand transpose.
    w = (weight * (1.0 / math.sqrt(num_scalars))).astype(x.dtype)  # (C0, H)

    x_in = x
    if num_scalars == irreps_dim or num_scalars % 128 == 0:
        # Scalar (0e) block is the whole row or lane-aligned: DMA only those columns.
        c_blk = num_scalars
    elif irreps_dim > 3 * num_scalars:
        # Unaligned scalar block with a wide l>0 tail: one-time contiguous wrapper copy
        # of the 0e columns (2*N*C0 HBM traffic) beats streaming all channels (N*irreps_dim).
        x_in = jnp.asarray(x[:, :num_scalars])
        c_blk = num_scalars
    else:
        # Narrow l>0 tail: stream full rows, zero the weight over non-scalar channels
        # (they contribute 0, matching the absent 0e->0e path for l>0 irreps).
        # NOTE: non-finite values in l>0 channels would propagate as 0*NaN/Inf here,
        # unlike a hard slice; acceptable for finite activations.
        c_blk = irreps_dim
        w = jnp.pad(w, ((0, irreps_dim - num_scalars), (0, 0)))

    # --- Byte-targeted node tiling -------------------------------------------------
    # VMEM footprint per node row (lane-padded): x tile lanes + out tile lanes.
    c_lanes = _round_up(c_blk, 128)
    h_lanes = _round_up(H, 128)
    per_row_bytes = (c_lanes + h_lanes) * itemsize
    # Double-buffered (x tile + out tile) kept under target_vmem_bytes, which is below
    # every generation's default scoped VMEM (v5e 16 MiB, v6e/v7x 32 MiB, v7x 64 MiB
    # physical per TC), so no vmem_limit_bytes override is required.
    tile_n = (target_vmem_bytes // (2 * per_row_bytes)) // 128 * 128
    tile_n = max(128, min(tile_n, _round_up(N, 128)))
    grid = pl.cdiv(N, tile_n)

    cost = pl.CostEstimate(
        flops=2 * N * c_blk * H,
        transcendentals=0,
        bytes_accessed=(N * c_blk + N * H + c_blk * H) * itemsize,
    )

    out = pl.pallas_call(
        _readout_kernel,
        out_shape=jax.ShapeDtypeStruct((N, H), x.dtype),
        grid_spec=pltpu.PrefetchScalarGridSpec(
            num_scalar_prefetch=0,
            grid=(grid,),
            in_specs=[
                pl.BlockSpec((tile_n, c_blk), lambda i: (i, 0)),  # node slab of x
                pl.BlockSpec((c_blk, H), lambda i: (0, 0)),       # resident weight
            ],
            out_specs=pl.BlockSpec((tile_n, H), lambda i: (i, 0)),
        ),
        compiler_params=pltpu.CompilerParams(
            # Node axis is embarrassingly parallel (shards across both TCs on v7x).
            # TODO(synk): verify in an xprof trace that both v7x TensorCores stream; if
            # not, switch this axis to pltpu.CORE_PARALLEL / explicit core_map.
            dimension_semantics=("parallel",),
        ),
        cost_estimate=cost,
    )(x_in, w)
    return out  # (N, H)


def _reference(x, weight, num_scalars):
    return (x[:, :num_scalars] @ weight) / jnp.sqrt(float(num_scalars))


if __name__ == "__main__":
    key = jax.random.PRNGKey(0)

    # Config A (the module's typical use): irreps_in = "32x0e + 16x1o" -> dim 80,
    # irreps_out = "0e" -> H = 1.  Hits the zero-padded-weight fallback and a partial
    # node tile (N not a multiple of 128).
    num_nodes, num_scalars, irreps_dim = 200, 32, 32 + 16 * 3
    kx, kw, key = jax.random.split(key, 3)
    x = jax.random.normal(kx, (num_nodes, irreps_dim), dtype=jnp.float32)
    weight = jax.random.normal(kw, (num_scalars, 1), dtype=jnp.float32)
    out = jax.block_until_ready(linear_readout_block(x, weight, num_scalars))
    assert out.shape == (num_nodes, 1)
    assert jnp.allclose(out, _reference(x, weight, num_scalars), atol=1e-5, rtol=1e-5)

    # Config B: unaligned 0e block with a wide l>0 tail -> wrapper-copy branch.
    num_nodes, num_scalars, irreps_dim = 300, 40, 40 + 50 * 3
    kx, kw, key = jax.random.split(key, 3)
    x = jax.random.normal(kx, (num_nodes, irreps_dim), dtype=jnp.float32)
    weight = jax.random.normal(kw, (num_scalars, 1), dtype=jnp.float32)
    out = jax.block_until_ready(linear_readout_block(x, weight, num_scalars))
    assert out.shape == (num_nodes, 1)
    assert jnp.allclose(out, _reference(x, weight, num_scalars), atol=1e-5, rtol=1e-5)

    # Config C: lane-aligned 0e block -> column-only DMA branch.
    num_nodes, num_scalars, irreps_dim = 260, 128, 128 + 64 * 3
    kx, kw, key = jax.random.split(key, 3)
    x = jax.random.normal(kx, (num_nodes, irreps_dim), dtype=jnp.float32)
    weight = jax.random.normal(kw, (num_scalars, 1), dtype=jnp.float32)
    out = jax.block_until_ready(linear_readout_block(x, weight, num_scalars))
    assert out.shape == (num_nodes, 1)
    assert jnp.allclose(out, _reference(x, weight, num_scalars), atol=1e-5, rtol=1e-5)

    print("KERNEL_OK")
</pallas_src>

<mosaic_0001>
module attributes {stable_mosaic.version = 11 : i64} {
  func.func @_readout_kernel(%arg0: i32, %arg1: memref<256x80xf32, #tpu.memory_space<vmem>>, %arg2: memref<80x1xf32, #tpu.memory_space<vmem>>, %arg3: memref<256x1xf32, #tpu.memory_space<vmem>>) attributes {dimension_semantics = [#tpu.dimension_semantics<parallel>], iteration_bounds = array<i64: 1>, scalar_prefetch = 0 : i64, scratch_operands = 0 : i64, tpu.core_type = #tpu.core_type<tc>, window_params = [{transform_indices = @transform_0, window_bounds = array<i64: 256, 80>}, {pipeline_mode = #tpu.pipeline_mode<synchronous>, transform_indices = @transform_1, window_bounds = array<i64: 80, 1>}, {transform_indices = @transform_2, window_bounds = array<i64: 256, 1>}]} {
    %c0 = arith.constant 0 : index
    %c0_0 = arith.constant 0 : index
    %0 = vector.load %arg1[%c0, %c0_0] : memref<256x80xf32, #tpu.memory_space<vmem>>, vector<256x80xf32>
    %c0_1 = arith.constant 0 : index
    %c0_2 = arith.constant 0 : index
    %1 = vector.load %arg2[%c0_1, %c0_2] : memref<80x1xf32, #tpu.memory_space<vmem>>, vector<80x1xf32>
    %cst = arith.constant dense<0.000000e+00> : vector<256x1xf32>
    %2 = tpu.matmul %0, %1, %cst {dimension_numbers = #tpu.dot_dimension_numbers<[1], [0], [0], [1], [0, 0, 1, 1], [], []>} : vector<256x80xf32>, vector<80x1xf32>, vector<256x1xf32> -> vector<256x1xf32>
    %c0_3 = arith.constant 0 : index
    %c0_4 = arith.constant 0 : index
    %3 = vector.load %arg3[%c0_3, %c0_4] : memref<256x1xf32, #tpu.memory_space<vmem>>, vector<256x1xf32>
    tpu.vector_store %arg3[%c0_3, %c0_4], %2 {strides = array<i32>} : memref<256x1xf32, #tpu.memory_space<vmem>>, vector<256x1xf32>,
    return
  }
  func.func @transform_0(%arg0: i32) -> (i32, i32) {
    %c0_i32 = arith.constant 0 : i32
    %c0_i32_0 = arith.constant 0 : i32
    return %arg0, %c0_i32 : i32, i32
  }
  func.func @transform_1(%arg0: i32) -> (i32, i32) {
    %c0_i32 = arith.constant 0 : i32
    %c0_i32_0 = arith.constant 0 : i32
    %c0_i32_1 = arith.constant 0 : i32
    return %c0_i32, %c0_i32_0 : i32, i32
  }
  func.func @transform_2(%arg0: i32) -> (i32, i32) {
    %c0_i32 = arith.constant 0 : i32
    %c0_i32_0 = arith.constant 0 : i32
    return %arg0, %c0_i32 : i32, i32
  }
}

</mosaic_0001>

<bundles_post_ra>
// kernel: tpu_custom_call.1
= control target key start
LH: loop header
LB: loop body
LE: loop exit
PB: predicated region body
PF: predicated region fallthrough
CT: control target
= control target key end

     0   :  { %vm53_vm0 = vcmask 654336   ;;  %vm375_vm1 = vcmask 7168   ;;  %s980_s0 = inlined_call_operand.vmem [shape: f32[200,80], index: 0, kind: input, shape index: {}]   ;;  %s981_s1 = inlined_call_operand.vmem [shape: f32[80,1], index: 1, kind: input, shape index: {}]   ;;  %s982_s2 = inlined_call_operand.vmem [shape: f32[200,1], index: 2, kind: output, shape index: {}]  }
   0x1   :  { %v52_v0 = vld [vmem:[%s981_s1 + $0x48] sm:$0xff]  ;;  %v51_v1 = vld [vmem:[%s981_s1 + $0x40] sm:$0xff]  ;;  %v50_v2 = vld [vmem:[%s981_s1 + $0x38] sm:$0xff] }
   0x2   :  { %619 = vmatprep.subr.mxu0 %v52_v0  ;;  %687 = vmatprep.subr.mxu1 %v52_v0  ;;  %v49_v3 = vld [vmem:[%s981_s1 + $0x30] sm:$0xff]  ;;  %v48_v4 = vld [vmem:[%s981_s1 + $0x28] sm:$0xff]  ;;  %v47_v5 = vld [vmem:[%s981_s1 + $0x20] sm:$0xff] }
   0x3   :  { %620 = vmatpush3.msra.mxu0 %v52_v0  ;;  %697 = vmatpush3.msra.mxu1 %v52_v0  ;;  %v46_v6 = vld [vmem:[%s981_s1 + $0x18] sm:$0xff]  ;;  %v45_v7 = vld [vmem:[%s981_s1 + $0x10] sm:$0xff]  ;;  %v11_v8 = vld [vmem:[%s980_s0] sm:$0xff] }
   0x4   :  { %621 = vmatprep.subr.mxu0 %v51_v1  ;;  %688 = vmatprep.subr.mxu1 %v51_v1  ;;  %v44_v9 = vld [vmem:[%s981_s1 + $0x8] sm:$0xff]  ;;  %v43_v10 = vld [vmem:[%s981_s1] sm:$0xff]  ;;  %v13_v12 = vld [vmem:[%s980_s0 + $0x10] sm:$0xff] }
   0x5   :  { %622 = vmatpush3.msra.mxu0 %v51_v1  ;;  %698 = vmatpush3.msra.mxu1 %v51_v1  ;;  %v12_v11 = vld [vmem:[%s980_s0 + $0x8] sm:$0xff]  ;;  %v27_v13 = vld [vmem:[%s980_s0 + $0x80] sm:$0xff]  ;;  %v29_v15 = vld [vmem:[%s980_s0 + $0x90] sm:$0xff] }
   0x6   :  { %623 = vmatprep.subr.mxu0 %v50_v2  ;;  %689 = vmatprep.subr.mxu1 %v50_v2  ;;  %v28_v14 = vld [vmem:[%s980_s0 + $0x88] sm:$0xff]  ;;  %v14_v16 = vld [vmem:[%s980_s0 + $0x18] sm:$0xff]  ;;  %v15_v17 = vld [vmem:[%s980_s0 + $0x20] sm:$0xff] }
   0x7   :  { %624 = vmatpush3.msra.mxu0 %v50_v2  ;;  %699 = vmatpush3.msra.mxu1 %v50_v2  ;;  %v30_v18 = vld [vmem:[%s980_s0 + $0x98] sm:$0xff]  ;;  %v31_v19 = vld [vmem:[%s980_s0 + $0xa0] sm:$0xff]  ;;  %v16_v20 = vld [vmem:[%s980_s0 + $0x28] sm:$0xff] }
   0x8   :  { %625 = vmatprep.subr.mxu0 %v49_v3  ;;  %690 = vmatprep.subr.mxu1 %v49_v3  ;;  %v17_v21 = vld [vmem:[%s980_s0 + $0x30] sm:$0xff]  ;;  %v32_v22 = vld [vmem:[%s980_s0 + $0xa8] sm:$0xff]  ;;  %v18_v24 = vld [vmem:[%s980_s0 + $0x38] sm:$0xff] }
   0x9   :  { %626 = vmatpush3.msra.mxu0 %v49_v3  ;;  %700 = vmatpush3.msra.mxu1 %v49_v3  ;;  %v33_v23 = vld [vmem:[%s980_s0 + $0xb0] sm:$0xff]  ;;  %v19_v25 = vld [vmem:[%s980_s0 + $0x40] sm:$0xff]  ;;  %v34_v26 = vld [vmem:[%s980_s0 + $0xb8] sm:$0xff] }
   0xa   :  { %627 = vmatprep.subr.mxu0 %v48_v4  ;;  %691 = vmatprep.subr.mxu1 %v48_v4  ;;  %v35_v27 = vld [vmem:[%s980_s0 + $0xc0] sm:$0xff]  ;;  %v20_v28 = vld [vmem:[%s980_s0 + $0x48] sm:$0xff]  ;;  %v21_v29 = vld [vmem:[%s980_s0 + $0x50] sm:$0xff] }
   0xb   :  { %628 = vmatpush3.msra.mxu0 %v48_v4  ;;  %701 = vmatpush3.msra.mxu1 %v48_v4  ;;  %v36_v30 = vld [vmem:[%s980_s0 + $0xc8] sm:$0xff]  ;;  %v37_v31 = vld [vmem:[%s980_s0 + $0xd0] sm:$0xff]  ;;  %v22_v32 = vld [vmem:[%s980_s0 + $0x58] sm:$0xff] }
   0xc   :  { %629 = vmatprep.subr.mxu0 %v47_v5  ;;  %692 = vmatprep.subr.mxu1 %v47_v5  ;;  %v23_v33 = vld [vmem:[%s980_s0 + $0x60] sm:$0xff]  ;;  %v38_v34 = vld [vmem:[%s980_s0 + $0xd8] sm:$0xff]  ;;  %v24_v36 = vld [vmem:[%s980_s0 + $0x68] sm:$0xff] }
   0xd   :  { %630 = vmatpush3.msra.mxu0 %v47_v5  ;;  %702 = vmatpush3.msra.mxu1 %v47_v5  ;;  %v39_v35 = vld [vmem:[%s980_s0 + $0xe0] sm:$0xff]  ;;  %v25_v37 = vld [vmem:[%s980_s0 + $0x70] sm:$0xff]  ;;  %v40_v38 = vld [vmem:[%s980_s0 + $0xe8] sm:$0xff] }
   0xe   :  { %631 = vmatprep.subr.mxu0 %v46_v6  ;;  %693 = vmatprep.subr.mxu1 %v46_v6  ;;  %v41_v39 = vld [vmem:[%s980_s0 + $0xf0] sm:$0xff]  ;;  %v26_v40 = vld [vmem:[%s980_s0 + $0x78] sm:$0xff] }
   0xf   :  { %632 = vmatpush3.msra.mxu0 %v46_v6  ;;  %703 = vmatpush3.msra.mxu1 %v46_v6  ;;  %v42_v41 = vld [vmem:[%s980_s0 + $0xf8] sm:$0xff] }
  0x10   :  { %633 = vmatprep.subr.mxu0 %v45_v7  ;;  %639 = vmatprep.mubr.msk.f32.mxu0 %vm53_vm0, %v11_v8 }
  0x11   :  { %634 = vmatpush3.msra.mxu0 %v45_v7  ;;  %694 = vmatprep.subr.mxu1 %v45_v7 }
  0x12   :  { %635 = vmatprep.subr.mxu0 %v44_v9  ;;  %704 = vmatpush3.msra.mxu1 %v45_v7 }
  0x13   :  { %636 = vmatpush3.msra.mxu0 %v44_v9  ;;  %695 = vmatprep.subr.mxu1 %v44_v9 }
  0x14   :  { %637 = vmatprep.subr.mxu0 %v43_v10  ;;  %705 = vmatpush3.msra.mxu1 %v44_v9 }
  0x15   :  { %638 = vmatpush3.msra.mxu0 %v43_v10  ;;  %696 = vmatprep.subr.mxu1 %v43_v10 }
  0x16   :  { %640 = vmatmul.mubr.msk.f32.vlgmr.msra.gmra.mxu0 %vm53_vm0, %v12_v11  ;;  %706 = vmatpush3.msra.mxu1 %v43_v10 }
  0x17   :  { %642 = vmatprep.mubr.msk.f32.mxu0 %vm53_vm0, %v13_v12  ;;  %663 = vmatprep.mubr.msk.f32.mxu1 %vm53_vm0, %v27_v13 }
  0x18   :  { %664 = vmatmul.mubr.msk.f32.vlgmr.msra.gmra.mxu1 %vm53_vm0, %v28_v14 }
  0x19   :  { %666 = vmatprep.mubr.msk.f32.mxu1 %vm53_vm0, %v29_v15 }
  0x1a   :  { %643 = vmatmul.mubr.msk.f32.gmra.mxu0 %vm53_vm0, %v14_v16 }
  0x1b   :  { %645 = vmatprep.mubr.msk.f32.mxu0 %vm53_vm0, %v15_v17 }
  0x1c   :  { %667 = vmatmul.mubr.msk.f32.gmra.mxu1 %vm53_vm0, %v30_v18 }
  0x1d   :  { %669 = vmatprep.mubr.msk.f32.mxu1 %vm53_vm0, %v31_v19 }
  0x1e   :  { %646 = vmatmul.mubr.msk.f32.gmra.mxu0 %vm53_vm0, %v16_v20 }
  0x1f   :  { %648 = vmatprep.mubr.msk.f32.mxu0 %vm53_vm0, %v17_v21 }
  0x20   :  { %670 = vmatmul.mubr.msk.f32.gmra.mxu1 %vm53_vm0, %v32_v22 }
  0x21   :  { %672 = vmatprep.mubr.msk.f32.mxu1 %vm53_vm0, %v33_v23 }
  0x22   :  { %649 = vmatmul.mubr.msk.f32.gmra.mxu0 %vm53_vm0, %v18_v24 }
  0x23   :  { %651 = vmatprep.mubr.msk.f32.mxu0 %vm53_vm0, %v19_v25 }
  0x24   :  { %673 = vmatmul.mubr.msk.f32.gmra.mxu1 %vm53_vm0, %v34_v26 }
  0x25   :  { %675 = vmatprep.mubr.msk.f32.mxu1 %vm53_vm0, %v35_v27 }
  0x26   :  { %652 = vmatmul.mubr.msk.f32.gmra.mxu0 %vm53_vm0, %v20_v28 }
  0x27   :  { %654 = vmatprep.mubr.msk.f32.mxu0 %vm53_vm0, %v21_v29 }
  0x28   :  { %676 = vmatmul.mubr.msk.f32.gmra.mxu1 %vm53_vm0, %v36_v30 }
  0x29   :  { %678 = vmatprep.mubr.msk.f32.mxu1 %vm53_vm0, %v37_v31 }
  0x2a   :  { %655 = vmatmul.mubr.msk.f32.gmra.mxu0 %vm53_vm0, %v22_v32 }
  0x2b   :  { %657 = vmatprep.mubr.msk.f32.mxu0 %vm53_vm0, %v23_v33 }
  0x2c   :  { %679 = vmatmul.mubr.msk.f32.gmra.mxu1 %vm53_vm0, %v38_v34 }
  0x2d   :  { %681 = vmatprep.mubr.msk.f32.mxu1 %vm53_vm0, %v39_v35 }
  0x2e   :  { %658 = vmatmul.mubr.msk.f32.gmra.mxu0 %vm53_vm0, %v24_v36 }
  0x2f   :  { %660 = vmatprep.mubr.msk.f32.mxu0 %vm53_vm0, %v25_v37 }
  0x30   :  { %682 = vmatmul.mubr.msk.f32.gmra.mxu1 %vm53_vm0, %v40_v38 }
  0x31   :  { %684 = vmatprep.mubr.msk.f32.mxu1 %vm53_vm0, %v41_v39 }
  0x32   :  { %661 = vmatmul.mubr.msk.f32.gmra.mxu0 %vm53_vm0, %v26_v40 }
  0x34   :  { %685 = vmatmul.mubr.msk.f32.gmra.mxu1 %vm53_vm0, %v42_v41 }
  0xd6   :  { %v641_v42 = vpop.f32.mrf.mxu0 }
  0xd7   :  { %377 = vst.msk [vmem:[#allocation2 + $0x8] sm:$0xff] %vm375_vm1, %v641_v42 }
  0xd8   :  { %v216_v43 = vpop.f32.mrf.mxu0  ;;  %v665_v44 = vpop.f32.mrf.mxu1 }
  0xd9   :  { %376 = vst.msk [vmem:[#allocation2] sm:$0xff] %vm375_vm1, %v216_v43  ;;  %393 = vst.msk [vmem:[#allocation2 + $0x88] sm:$0xff] %vm375_vm1, %v665_v44 }
  0xda   :  { %v644_v45 = vpop.f32.mrf.mxu0  ;;  %v296_v46 = vpop.f32.mrf.mxu1 }
  0xdb   :  { %379 = vst.msk [vmem:[#allocation2 + $0x18] sm:$0xff] %vm375_vm1, %v644_v45  ;;  %392 = vst.msk [vmem:[#allocation2 + $0x80] sm:$0xff] %vm375_vm1, %v296_v46 }
  0xdc   :  { %v226_v47 = vpop.f32.mrf.mxu0  ;;  %v668_v48 = vpop.f32.mrf.mxu1 }
  0xdd   :  { %378 = vst.msk [vmem:[#allocation2 + $0x10] sm:$0xff] %vm375_vm1, %v226_v47  ;;  %395 = vst.msk [vmem:[#allocation2 + $0x98] sm:$0xff] %vm375_vm1, %v668_v48 }
  0xde   :  { %v488_v49 = vld [vmem:[#allocation2 + $0x8] sm:$0xff]  ;;  %v647_v50 = vpop.f32.mrf.mxu0  ;;  %v306_v51 = vpop.f32.mrf.mxu1 }
  0xdf   :  { %489 = vst [vmem:[%s982_s2 + $0x8] sm:$0xff] %v488_v49  ;;  %381 = vst.msk [vmem:[#allocation2 + $0x28] sm:$0xff] %vm375_vm1, %v647_v50 }
  0xe0   :  { %394 = vst.msk [vmem:[#allocation2 + $0x90] sm:$0xff] %vm375_vm1, %v306_v51  ;;  %v486_v52 = vld [vmem:[#allocation2] sm:$0xff]  ;;  %v520_v53 = vld [vmem:[#allocation2 + $0x88] sm:$0xff]  ;;  %v236_v54 = vpop.f32.mrf.mxu0  ;;  %v671_v55 = vpop.f32.mrf.mxu1 }
  0xe1   :  { %487 = vst [vmem:[%s982_s2] sm:$0xff] %v486_v52  ;;  %521 = vst [vmem:[%s982_s2 + $0x88] sm:$0xff] %v520_v53 }
  0xe2   :  { %380 = vst.msk [vmem:[#allocation2 + $0x20] sm:$0xff] %vm375_vm1, %v236_v54  ;;  %397 = vst.msk [vmem:[#allocation2 + $0xa8] sm:$0xff] %vm375_vm1, %v671_v55  ;;  %v492_v56 = vld [vmem:[#allocation2 + $0x18] sm:$0xff]  ;;  %v518_v57 = vld [vmem:[#allocation2 + $0x80] sm:$0xff]  ;;  %v650_v58 = vpop.f32.mrf.mxu0  ;;  %v316_v59 = vpop.f32.mrf.mxu1 }
  0xe3   :  { %493 = vst [vmem:[%s982_s2 + $0x18] sm:$0xff] %v492_v56  ;;  %519 = vst [vmem:[%s982_s2 + $0x80] sm:$0xff] %v518_v57 }
  0xe4   :  { %383 = vst.msk [vmem:[#allocation2 + $0x38] sm:$0xff] %vm375_vm1, %v650_v58  ;;  %396 = vst.msk [vmem:[#allocation2 + $0xa0] sm:$0xff] %vm375_vm1, %v316_v59  ;;  %v490_v60 = vld [vmem:[#allocation2 + $0x10] sm:$0xff]  ;;  %v524_v61 = vld [vmem:[#allocation2 + $0x98] sm:$0xff]  ;;  %v246_v62 = vpop.f32.mrf.mxu0  ;;  %v674_v63 = vpop.f32.mrf.mxu1 }
  0xe5   :  { %491 = vst [vmem:[%s982_s2 + $0x10] sm:$0xff] %v490_v60  ;;  %525 = vst [vmem:[%s982_s2 + $0x98] sm:$0xff] %v524_v61 }
  0xe6   :  { %382 = vst.msk [vmem:[#allocation2 + $0x30] sm:$0xff] %vm375_vm1, %v246_v62  ;;  %399 = vst.msk [vmem:[#allocation2 + $0xb8] sm:$0xff] %vm375_vm1, %v674_v63  ;;  %v496_v0 = vld [vmem:[#allocation2 + $0x28] sm:$0xff]  ;;  %v653_v2 = vpop.f32.mrf.mxu0  ;;  %v326_v3 = vpop.f32.mrf.mxu1 }
  0xe7   :  { %v522_v1 = vld [vmem:[#allocation2 + $0x90] sm:$0xff]  ;;  %497 = vst [vmem:[%s982_s2 + $0x28] sm:$0xff] %v496_v0  ;;  %385 = vst.msk [vmem:[#allocation2 + $0x48] sm:$0xff] %vm375_vm1, %v653_v2 }
  0xe8   :  { %523 = vst [vmem:[%s982_s2 + $0x90] sm:$0xff] %v522_v1  ;;  %398 = vst.msk [vmem:[#allocation2 + $0xb0] sm:$0xff] %vm375_vm1, %v326_v3  ;;  %v256_v6 = vpop.f32.mrf.mxu0  ;;  %v677_v7 = vpop.f32.mrf.mxu1 }
  0xe9   :  { %v494_v4 = vld [vmem:[#allocation2 + $0x20] sm:$0xff]  ;;  %v528_v5 = vld [vmem:[#allocation2 + $0xa8] sm:$0xff]  ;;  %384 = vst.msk [vmem:[#allocation2 + $0x40] sm:$0xff] %vm375_vm1, %v256_v6 }
  0xea   :  { %495 = vst [vmem:[%s982_s2 + $0x20] sm:$0xff] %v494_v4  ;;  %529 = vst [vmem:[%s982_s2 + $0xa8] sm:$0xff] %v528_v5  ;;  %v656_v10 = vpop.f32.mrf.mxu0  ;;  %v336_v11 = vpop.f32.mrf.mxu1 }
  0xeb   :  { %v500_v8 = vld [vmem:[#allocation2 + $0x38] sm:$0xff]  ;;  %v526_v9 = vld [vmem:[#allocation2 + $0xa0] sm:$0xff]  ;;  %387 = vst.msk [vmem:[#allocation2 + $0x58] sm:$0xff] %vm375_vm1, %v656_v10  ;;  %400 = vst.msk [vmem:[#allocation2 + $0xc0] sm:$0xff] %vm375_vm1, %v336_v11 }
  0xec   :  { %501 = vst [vmem:[%s982_s2 + $0x38] sm:$0xff] %v500_v8  ;;  %527 = vst [vmem:[%s982_s2 + $0xa0] sm:$0xff] %v526_v9  ;;  %v266_v14 = vpop.f32.mrf.mxu0  ;;  %v680_v15 = vpop.f32.mrf.mxu1 }
  0xed   :  { %v498_v12 = vld [vmem:[#allocation2 + $0x30] sm:$0xff]  ;;  %v532_v13 = vld [vmem:[#allocation2 + $0xb8] sm:$0xff]  ;;  %386 = vst.msk [vmem:[#allocation2 + $0x50] sm:$0xff] %vm375_vm1, %v266_v14 }
  0xee   :  { %499 = vst [vmem:[%s982_s2 + $0x30] sm:$0xff] %v498_v12  ;;  %533 = vst [vmem:[%s982_s2 + $0xb8] sm:$0xff] %v532_v13  ;;  %v504_v16 = vld [vmem:[#allocation2 + $0x48] sm:$0xff]  ;;  %v659_v18 = vpop.f32.mrf.mxu0  ;;  %v346_v19 = vpop.f32.mrf.mxu1 }
  0xef   :  { %v530_v17 = vld [vmem:[#allocation2 + $0xb0] sm:$0xff]  ;;  %505 = vst [vmem:[%s982_s2 + $0x48] sm:$0xff] %v504_v16  ;;  %389 = vst.msk [vmem:[#allocation2 + $0x68] sm:$0xff] %vm375_vm1, %v659_v18 }
  0xf0   :  { %531 = vst [vmem:[%s982_s2 + $0xb0] sm:$0xff] %v530_v17  ;;  %v502_v20 = vld [vmem:[#allocation2 + $0x40] sm:$0xff]  ;;  %v276_v21 = vpop.f32.mrf.mxu0  ;;  %v683_v22 = vpop.f32.mrf.mxu1 }
  0xf1   :  { %503 = vst [vmem:[%s982_s2 + $0x40] sm:$0xff] %v502_v20  ;;  %388 = vst.msk [vmem:[#allocation2 + $0x60] sm:$0xff] %vm375_vm1, %v276_v21 }
  0xf2   :  { %v508_v23 = vld [vmem:[#allocation2 + $0x58] sm:$0xff]  ;;  %v534_v24 = vld [vmem:[#allocation2 + $0xc0] sm:$0xff]  ;;  %v662_v25 = vpop.f32.mrf.mxu0  ;;  %v356_v26 = vpop.f32.mrf.mxu1 }
  0xf3   :  { %509 = vst [vmem:[%s982_s2 + $0x58] sm:$0xff] %v508_v23  ;;  %535 = vst [vmem:[%s982_s2 + $0xc0] sm:$0xff] %v534_v24 }
  0xf4   :  { %391 = vst.msk [vmem:[#allocation2 + $0x78] sm:$0xff] %vm375_vm1, %v662_v25  ;;  %v506_v27 = vld [vmem:[#allocation2 + $0x50] sm:$0xff]  ;;  %v286_v28 = vpop.f32.mrf.mxu0  ;;  %v686_v29 = vpop.f32.mrf.mxu1 }
  0xf5   :  { %507 = vst [vmem:[%s982_s2 + $0x50] sm:$0xff] %v506_v27  ;;  %390 = vst.msk [vmem:[#allocation2 + $0x70] sm:$0xff] %vm375_vm1, %v286_v28 }
  0xf6   :  { %v512_v30 = vld [vmem:[#allocation2 + $0x68] sm:$0xff]  ;;  %v366_v31 = vpop.f32.mrf.mxu1 }
  0xf7   :  { %513 = vst [vmem:[%s982_s2 + $0x68] sm:$0xff] %v512_v30 }
  0xf8   :  { %v510_v32 = vld [vmem:[#allocation2 + $0x60] sm:$0xff] }
  0xf9   :  { %511 = vst [vmem:[%s982_s2 + $0x60] sm:$0xff] %v510_v32 }
  0xfb   :  { %v516_v33 = vld [vmem:[#allocation2 + $0x78] sm:$0xff] }
  0xfc   :  { %517 = vst [vmem:[%s982_s2 + $0x78] sm:$0xff] %v516_v33  ;;  %v514_v34 = vld [vmem:[#allocation2 + $0x70] sm:$0xff] }
  0xfd   :  { %515 = vst [vmem:[%s982_s2 + $0x70] sm:$0xff] %v514_v34 }

</bundles_post_ra>
